<compile_context>
chip_gen: v7x
topology: tpu7x:2x2x1
jax: 0.10.0
libtpu: 0.0.40
codegen_flags: <defaults>
</compile_context>

<pallas_src>
import jax
import jax.numpy as jnp
from jax.experimental import pallas as pl
from jax.experimental.pallas import tpu as pltpu


def _round_up(a: int, b: int) -> int:
    return (a + b - 1) // b * b


def _cdiv(a: int, b: int) -> int:
    return (a + b - 1) // b


def _make_kernel(n_extra: int, K: int, d: int, T_tile: int, has_halo: bool,
                 mat_dtype):
    """h = causal-conv(x) + b0 ; then n_extra times: h = relu(h) @ Wi + bi."""

    def body(xf, w0_ref, b0_ref, extra_refs, o_ref):
        xf = xf.astype(mat_dtype)                    # in-kernel cast (VPU, free)
        # causal dilated conv == sum of K shifted-row-window matmuls
        h = jnp.dot(xf[0:T_tile, :], w0_ref[0],
                    preferred_element_type=jnp.float32)
        for k in range(1, K):
            h = h + jnp.dot(xf[k * d:k * d + T_tile, :], w0_ref[k],
                            preferred_element_type=jnp.float32)
        h = h + b0_ref[...]                          # (1, N_pad) f32 bias
        for i in range(n_extra):                     # static unroll over layers
            w = extra_refs[2 * i][...]
            b = extra_refs[2 * i + 1][...]
            h = jnp.maximum(h, 0.0)                  # ReLU in f32
            h = jnp.dot(h.astype(w.dtype), w,
                        preferred_element_type=jnp.float32) + b
        o_ref[...] = h.astype(o_ref.dtype)

    if has_halo:
        def kernel(halo_ref, x_ref, w0_ref, b0_ref, *rest):
            o_ref = rest[-1]
            # halo = (K-1)*d rows preceding this tile; concat gives the full
            # (T_tile + pad, F_in) causal window for this output tile.
            xf = jnp.concatenate([halo_ref[0], x_ref[...]], axis=0)
            body(xf, w0_ref, b0_ref, rest[:-1], o_ref)
    else:
        def kernel(x_ref, w0_ref, b0_ref, *rest):
            o_ref = rest[-1]
            body(x_ref[...], w0_ref, b0_ref, rest[:-1], o_ref)

    return kernel


def memory_dense_forward(x, conv_w, conv_b, linear_params, *,
                         step_size: int, step_count: int,
                         use_bf16_matmul: bool = True,
                         out_dtype=None,
                         max_rows_per_tile: int | None = None):
    """MemoryDense forward.

    x            : (T, F_in)
    conv_w       : (F_out, F_in, K)  -- torch Conv1d weight layout, K = step_count
    conv_b       : (F_out,)
    linear_params: list of (W (F_out, F_out) torch [out,in] layout, b (F_out,))
    returns      : (T, F_out) in `out_dtype` (default: x.dtype)
    """
    T, F_in = x.shape
    F_out = conv_w.shape[0]
    K, d = step_count, step_size
    assert conv_w.shape == (F_out, F_in, K)
    n_extra = len(linear_params)
    pad = (K - 1) * d
    has_halo = pad > 0

    out_dtype = x.dtype if out_dtype is None else out_dtype
    mat_dtype = jnp.bfloat16 if use_bf16_matmul else jnp.float32
    mat_itemsize = 2 if use_bf16_matmul else 4
    x_itemsize = jnp.dtype(x.dtype).itemsize
    out_itemsize = jnp.dtype(out_dtype).itemsize

    N_pad = _round_up(F_out, 128)                    # lane-dense output columns

    # ---- weights: conv as K stacked (F_in, N_pad) mats; linears transposed ----
    # (one-time prep; activation side needs no wrapper pad/cast passes)
    w0 = jnp.transpose(conv_w, (2, 1, 0))                               # (K, F_in, F_out)
    w0 = jnp.pad(w0, ((0, 0), (0, 0), (0, N_pad - F_out))).astype(mat_dtype)
    b0 = jnp.pad(conv_b.astype(jnp.float32), (0, N_pad - F_out)).reshape(1, N_pad)
    extra = []
    for (w, b) in linear_params:
        extra.append(jnp.pad(w.T, ((0, N_pad - F_out),
                                   (0, N_pad - F_out))).astype(mat_dtype))
        extra.append(jnp.pad(b.astype(jnp.float32),
                             (0, N_pad - F_out)).reshape(1, N_pad))

    # ---- VMEM-budget-driven row tile ----
    try:
        vmem_capacity = int(pltpu.get_tpu_info().vmem_capacity_bytes)
    except Exception:
        vmem_capacity = 64 * 1024 * 1024             # conservative (v7x per-TC)
    vmem_cap = int(vmem_capacity * 0.8)              # headroom for compiler scratch

    row_mult = 8 if x_itemsize >= 4 else 16
    weight_bytes = ((K * F_in * N_pad + n_extra * N_pad * N_pad) * mat_itemsize
                    + (1 + n_extra) * N_pad * 4)
    fixed_bytes = weight_bytes                       # single-buffered weights
    fixed_bytes += 2 * max(pad, 1) * F_in * x_itemsize   # halo (double-buffered)
    per_row = (2 * F_in * x_itemsize                 # x tile (double-buffered)
               + 2 * N_pad * out_itemsize            # out tile (double-buffered)
               + F_in * mat_itemsize                 # in-kernel bf16 copy of tile
               + 3 * N_pad * 4)                      # f32 h + temporaries

    budget = max(vmem_cap - fixed_bytes, row_mult * per_row)
    t_max = max((budget // per_row) // row_mult * row_mult, row_mult)
    t_max = min(t_max, 4096)
    if max_rows_per_tile is not None:
        t_max = min(t_max, max(row_mult, _round_up(max_rows_per_tile, row_mult)))

    T_rounded = _round_up(max(T, 1), row_mult)
    T_tile = min(t_max, T_rounded)
    # Keep >= 2-4 grid steps for large T: feeds both v7x TensorCores and lets
    # the pipeline hide x DMA / output writeback behind compute.
    if T_rounded >= 4 * 256:
        T_tile = min(T_tile, max(256, _round_up(_cdiv(T_rounded, 4), row_mult)))
    elif T_rounded >= 2 * 256:
        T_tile = min(T_tile, max(256, _round_up(_cdiv(T_rounded, 2), row_mult)))

    T_total = _round_up(T, T_tile)
    num_tiles = T_total // T_tile
    x_rows = x if T_total == T else jnp.pad(x, ((0, T_total - T), (0, 0)))

    # ---- per-tile halo: the (K-1)*d rows of x immediately preceding each tile ----
    inputs = []
    if has_halo:
        halo_parts = []
        for i in range(num_tiles):
            start = i * T_tile - pad
            if start >= 0:
                part = x[start:start + pad]
            elif i * T_tile > 0:
                part = jnp.concatenate(
                    [jnp.zeros((-start, F_in), x.dtype), x[0:i * T_tile]], axis=0)
            else:
                part = jnp.zeros((pad, F_in), x.dtype)
            halo_parts.append(part)
        halo = jnp.stack(halo_parts, axis=0)         # (num_tiles, pad, F_in)
        inputs.append(halo)
    inputs += [x_rows, w0, b0] + extra

    flops = 2 * T_total * (K * F_in * N_pad + n_extra * N_pad * N_pad)
    bytes_accessed = (T_total * F_in * x_itemsize
                      + num_tiles * pad * F_in * x_itemsize
                      + T_total * N_pad * out_itemsize
                      + weight_bytes)
    cost = pl.CostEstimate(flops=flops, transcendentals=0,
                           bytes_accessed=bytes_accessed)

    def _build_and_run(single_buffer_weights: bool):
        wkw = dict(pipeline_mode=pl.Buffered(1)) if single_buffer_weights else {}
        in_specs = []
        if has_halo:
            in_specs.append(pl.BlockSpec((1, pad, F_in), lambda i: (i, 0, 0)))
        in_specs.append(pl.BlockSpec((T_tile, F_in), lambda i: (i, 0)))
        in_specs.append(pl.BlockSpec(w0.shape, lambda i: (0, 0, 0), **wkw))
        in_specs.append(pl.BlockSpec(b0.shape, lambda i: (0, 0), **wkw))
        for p in extra:
            in_specs.append(pl.BlockSpec(p.shape, lambda i: (0, 0), **wkw))
        out_spec = pl.BlockSpec((T_tile, N_pad), lambda i: (i, 0))

        return pl.pallas_call(
            _make_kernel(n_extra, K, d, T_tile, has_halo, mat_dtype),
            out_shape=jax.ShapeDtypeStruct((T_total, N_pad), out_dtype),
            grid_spec=pltpu.PrefetchScalarGridSpec(
                num_scalar_prefetch=0,
                grid=(num_tiles,),
                in_specs=in_specs,
                out_specs=out_spec,
            ),
            compiler_params=pltpu.CompilerParams(
                dimension_semantics=("parallel",),
                vmem_limit_bytes=int(vmem_cap),
            ),
            cost_estimate=cost,
        )(*inputs)

    try:
        out_padded = _build_and_run(True)    # single-buffered resident weights
    except Exception:                        # fallback if Buffered(1) unsupported
        out_padded = _build_and_run(False)

    return out_padded[:T, :F_out]


def init_memory_dense_params(key, input_feature_count, output_feature_count,
                             step_size, step_count, layer_count,
                             dtype=jnp.float32):
    """Deterministic synthetic init mimicking torch defaults
    (U(-1/sqrt(fan_in), 1/sqrt(fan_in)))."""
    keys = jax.random.split(key, 2 + 2 * max(layer_count - 1, 0))
    bc = 1.0 / ((input_feature_count * step_count) ** 0.5)
    conv_w = jax.random.uniform(
        keys[0], (output_feature_count, input_feature_count, step_count),
        dtype, -bc, bc)
    conv_b = jax.random.uniform(keys[1], (output_feature_count,), dtype, -bc, bc)
    bl = 1.0 / (output_feature_count ** 0.5)
    linears = []
    for i in range(layer_count - 1):
        w = jax.random.uniform(keys[2 + 2 * i],
                               (output_feature_count, output_feature_count),
                               dtype, -bl, bl)
        b = jax.random.uniform(keys[3 + 2 * i], (output_feature_count,),
                               dtype, -bl, bl)
        linears.append((w, b))
    return conv_w, conv_b, linears


def memory_dense_reference(x, conv_w, conv_b, linears, *,
                           step_size, step_count, bf16_matmul=False):
    """Plain-JAX reference (same math as the torch Sequential)."""
    T, F_in = x.shape
    K, d = step_count, step_size
    xp = jnp.pad(x, (((K - 1) * d, 0), (0, 0)))
    x_mem = jnp.concatenate([xp[k * d:k * d + T, :] for k in range(K)], axis=1)
    w0 = jnp.transpose(conv_w, (2, 1, 0)).reshape(K * F_in, -1)

    def mm(a, b):
        if bf16_matmul:
            a = a.astype(jnp.bfloat16)
            b = b.astype(jnp.bfloat16)
        return jnp.dot(a, b, preferred_element_type=jnp.float32)

    h = mm(x_mem, w0) + conv_b[None, :]
    for (w, b) in linears:
        h = jnp.maximum(h, 0.0)
        h = mm(h, w.T) + b[None, :]
    return h


if __name__ == "__main__":
    # Small shapes consistent with MemoryDense.forward:
    # x == [time frame count, input feature count]
    T = 8
    input_feature_count = 6
    output_feature_count = 10
    step_size = 2
    step_count = 3
    layer_count = 3

    key = jax.random.PRNGKey(0)
    kx, kp, kx2 = jax.random.split(key, 3)
    x = jax.random.normal(kx, (T, input_feature_count), jnp.float32)
    conv_w, conv_b, linears = init_memory_dense_params(
        kp, input_feature_count, output_feature_count,
        step_size, step_count, layer_count)

    y = memory_dense_forward(x, conv_w, conv_b, linears,
                             step_size=step_size, step_count=step_count,
                             use_bf16_matmul=True)
    y = jax.block_until_ready(y)
    assert y.shape == (T, output_feature_count)
    assert y.dtype == x.dtype

    # Check vs. a reference that uses the same bf16 MXU operands.
    ref_bf16 = memory_dense_reference(x, conv_w, conv_b, linears,
                                      step_size=step_size,
                                      step_count=step_count,
                                      bf16_matmul=True)
    assert jnp.allclose(y, ref_bf16, atol=2e-3, rtol=2e-3)

    # Loose sanity check vs. full-f32 reference (bf16 rounding tolerance).
    ref_f32 = memory_dense_reference(x, conv_w, conv_b, linears,
                                     step_size=step_size,
                                     step_count=step_count,
                                     bf16_matmul=False)
    assert jnp.allclose(y, ref_f32, atol=5e-2, rtol=5e-2)

    # Exercise the multi-tile path (cross-tile halo + row padding) with a small
    # forced tile size.
    T2 = 40
    x2 = jax.random.normal(kx2, (T2, input_feature_count), jnp.float32)
    y2 = memory_dense_forward(x2, conv_w, conv_b, linears,
                              step_size=step_size, step_count=step_count,
                              use_bf16_matmul=True, max_rows_per_tile=16)
    y2 = jax.block_until_ready(y2)
    ref2 = memory_dense_reference(x2, conv_w, conv_b, linears,
                                  step_size=step_size, step_count=step_count,
                                  bf16_matmul=True)
    assert y2.shape == (T2, output_feature_count)
    assert jnp.allclose(y2, ref2, atol=2e-3, rtol=2e-3)

    print("KERNEL_OK")
</pallas_src>

<mosaic_0001>
module attributes {stable_mosaic.version = 11 : i64} {
  func.func @kernel(%arg0: i32, %arg1: memref<1x4x6xf32, #tpu.memory_space<vmem>>, %arg2: memref<8x6xf32, #tpu.memory_space<vmem>>, %arg3: memref<3x6x128xbf16, #tpu.memory_space<vmem>>, %arg4: memref<1x128xf32, #tpu.memory_space<vmem>>, %arg5: memref<128x128xbf16, #tpu.memory_space<vmem>>, %arg6: memref<1x128xf32, #tpu.memory_space<vmem>>, %arg7: memref<128x128xbf16, #tpu.memory_space<vmem>>, %arg8: memref<1x128xf32, #tpu.memory_space<vmem>>, %arg9: memref<8x128xf32, #tpu.memory_space<vmem>>) attributes {dimension_semantics = [#tpu.dimension_semantics<parallel>], iteration_bounds = array<i64: 1>, scalar_prefetch = 0 : i64, scratch_operands = 0 : i64, tpu.core_type = #tpu.core_type<tc>, window_params = [{transform_indices = @transform_0, window_bounds = array<i64: 1, 4, 6>}, {transform_indices = @transform_1, window_bounds = array<i64: 8, 6>}, {pipeline_mode = #tpu.pipeline_mode<synchronous>, transform_indices = @transform_2, window_bounds = array<i64: 3, 6, 128>}, {pipeline_mode = #tpu.pipeline_mode<synchronous>, transform_indices = @transform_3, window_bounds = array<i64: 1, 128>}, {pipeline_mode = #tpu.pipeline_mode<synchronous>, transform_indices = @transform_4, window_bounds = array<i64: 128, 128>}, {pipeline_mode = #tpu.pipeline_mode<synchronous>, transform_indices = @transform_5, window_bounds = array<i64: 1, 128>}, {pipeline_mode = #tpu.pipeline_mode<synchronous>, transform_indices = @transform_6, window_bounds = array<i64: 128, 128>}, {pipeline_mode = #tpu.pipeline_mode<synchronous>, transform_indices = @transform_7, window_bounds = array<i64: 1, 128>}, {transform_indices = @transform_8, window_bounds = array<i64: 8, 128>}]} {
    %c0 = arith.constant 0 : index
    %c0_0 = arith.constant 0 : index
    %c0_1 = arith.constant 0 : index
    %0 = vector.load %arg1[%c0, %c0_0, %c0_1] : memref<1x4x6xf32, #tpu.memory_space<vmem>>, vector<1x4x6xf32>
    %1 = vector.shape_cast %0 : vector<1x4x6xf32> to vector<4x6xf32>
    %c0_2 = arith.constant 0 : index
    %c0_3 = arith.constant 0 : index
    %2 = vector.load %arg2[%c0_2, %c0_3] : memref<8x6xf32, #tpu.memory_space<vmem>>, vector<8x6xf32>
    %3 = tpu.concatenate %1, %2 in 0 : vector<4x6xf32>, vector<8x6xf32> -> vector<12x6xf32>
    %4 = arith.truncf %3 : vector<12x6xf32> to vector<12x6xbf16>
    %5 = vector.extract_strided_slice %4 {offsets = [0, 0], sizes = [8, 6], strides = [1, 1]} : vector<12x6xbf16> to vector<8x6xbf16>
    %c0_4 = arith.constant 0 : index
    %c0_5 = arith.constant 0 : index
    %c0_6 = arith.constant 0 : index
    %6 = vector.load %arg3[%c0_4, %c0_5, %c0_6] : memref<3x6x128xbf16, #tpu.memory_space<vmem>>, vector<1x6x128xbf16>
    %7 = vector.shape_cast %6 : vector<1x6x128xbf16> to vector<6x128xbf16>
    %cst = arith.constant dense<0.000000e+00> : vector<8x128xf32>
    %8 = tpu.matmul %5, %7, %cst {dimension_numbers = #tpu.dot_dimension_numbers<[1], [0], [0], [1], [0, 0, 1, 1], [], []>} : vector<8x6xbf16>, vector<6x128xbf16>, vector<8x128xf32> -> vector<8x128xf32>
    %9 = vector.extract_strided_slice %4 {offsets = [2, 0], sizes = [8, 6], strides = [1, 1]} : vector<12x6xbf16> to vector<8x6xbf16>
    %c1 = arith.constant 1 : index
    %c0_7 = arith.constant 0 : index
    %c0_8 = arith.constant 0 : index
    %10 = vector.load %arg3[%c1, %c0_7, %c0_8] : memref<3x6x128xbf16, #tpu.memory_space<vmem>>, vector<1x6x128xbf16>
    %11 = vector.shape_cast %10 : vector<1x6x128xbf16> to vector<6x128xbf16>
    %cst_9 = arith.constant dense<0.000000e+00> : vector<8x128xf32>
    %12 = tpu.matmul %9, %11, %cst_9 {dimension_numbers = #tpu.dot_dimension_numbers<[1], [0], [0], [1], [0, 0, 1, 1], [], []>} : vector<8x6xbf16>, vector<6x128xbf16>, vector<8x128xf32> -> vector<8x128xf32>
    %13 = arith.addf %8, %12 : vector<8x128xf32>
    %14 = vector.extract_strided_slice %4 {offsets = [4, 0], sizes = [8, 6], strides = [1, 1]} : vector<12x6xbf16> to vector<8x6xbf16>
    %c2 = arith.constant 2 : index
    %c0_10 = arith.constant 0 : index
    %c0_11 = arith.constant 0 : index
    %15 = vector.load %arg3[%c2, %c0_10, %c0_11] : memref<3x6x128xbf16, #tpu.memory_space<vmem>>, vector<1x6x128xbf16>
    %16 = vector.shape_cast %15 : vector<1x6x128xbf16> to vector<6x128xbf16>
    %cst_12 = arith.constant dense<0.000000e+00> : vector<8x128xf32>
    %17 = tpu.matmul %14, %16, %cst_12 {dimension_numbers = #tpu.dot_dimension_numbers<[1], [0], [0], [1], [0, 0, 1, 1], [], []>} : vector<8x6xbf16>, vector<6x128xbf16>, vector<8x128xf32> -> vector<8x128xf32>
    %18 = arith.addf %13, %17 : vector<8x128xf32>
    %c0_13 = arith.constant 0 : index
    %c0_14 = arith.constant 0 : index
    %19 = vector.load %arg4[%c0_13, %c0_14] : memref<1x128xf32, #tpu.memory_space<vmem>>, vector<1x128xf32>
    %20 = vector.broadcast %19 : vector<1x128xf32> to vector<8x128xf32>
    %21 = arith.addf %18, %20 : vector<8x128xf32>
    %c0_15 = arith.constant 0 : index
    %c0_16 = arith.constant 0 : index
    %22 = vector.load %arg5[%c0_15, %c0_16] : memref<128x128xbf16, #tpu.memory_space<vmem>>, vector<128x128xbf16>
    %c0_17 = arith.constant 0 : index
    %c0_18 = arith.constant 0 : index
    %23 = vector.load %arg6[%c0_17, %c0_18] : memref<1x128xf32, #tpu.memory_space<vmem>>, vector<1x128xf32>
    %cst_19 = arith.constant 0.000000e+00 : f32
    %24 = vector.broadcast %cst_19 : f32 to vector<8x128xf32>
    %25 = arith.maximumf %21, %24 : vector<8x128xf32>
    %26 = arith.truncf %25 : vector<8x128xf32> to vector<8x128xbf16>
    %cst_20 = arith.constant dense<0.000000e+00> : vector<8x128xf32>
    %27 = tpu.matmul %26, %22, %cst_20 {dimension_numbers = #tpu.dot_dimension_numbers<[1], [0], [0], [1], [0, 0, 1, 1], [], []>} : vector<8x128xbf16>, vector<128x128xbf16>, vector<8x128xf32> -> vector<8x128xf32>
    %28 = vector.broadcast %23 : vector<1x128xf32> to vector<8x128xf32>
    %29 = arith.addf %27, %28 : vector<8x128xf32>
    %c0_21 = arith.constant 0 : index
    %c0_22 = arith.constant 0 : index
    %30 = vector.load %arg7[%c0_21, %c0_22] : memref<128x128xbf16, #tpu.memory_space<vmem>>, vector<128x128xbf16>
    %c0_23 = arith.constant 0 : index
    %c0_24 = arith.constant 0 : index
    %31 = vector.load %arg8[%c0_23, %c0_24] : memref<1x128xf32, #tpu.memory_space<vmem>>, vector<1x128xf32>
    %cst_25 = arith.constant 0.000000e+00 : f32
    %32 = vector.broadcast %cst_25 : f32 to vector<8x128xf32>
    %33 = arith.maximumf %29, %32 : vector<8x128xf32>
    %34 = arith.truncf %33 : vector<8x128xf32> to vector<8x128xbf16>
    %cst_26 = arith.constant dense<0.000000e+00> : vector<8x128xf32>
    %35 = tpu.matmul %34, %30, %cst_26 {dimension_numbers = #tpu.dot_dimension_numbers<[1], [0], [0], [1], [0, 0, 1, 1], [], []>} : vector<8x128xbf16>, vector<128x128xbf16>, vector<8x128xf32> -> vector<8x128xf32>
    %36 = vector.broadcast %31 : vector<1x128xf32> to vector<8x128xf32>
    %37 = arith.addf %35, %36 : vector<8x128xf32>
    %c0_27 = arith.constant 0 : index
    %c0_28 = arith.constant 0 : index
    %38 = vector.load %arg9[%c0_27, %c0_28] : memref<8x128xf32, #tpu.memory_space<vmem>>, vector<8x128xf32>
    tpu.vector_store %arg9[%c0_27, %c0_28], %37 {strides = array<i32>} : memref<8x128xf32, #tpu.memory_space<vmem>>, vector<8x128xf32>,
    return
  }
  func.func @transform_0(%arg0: i32) -> (i32, i32, i32) {
    %c0_i32 = arith.constant 0 : i32
    %c0_i32_0 = arith.constant 0 : i32
    %c0_i32_1 = arith.constant 0 : i32
    return %arg0, %c0_i32, %c0_i32_0 : i32, i32, i32
  }
  func.func @transform_1(%arg0: i32) -> (i32, i32) {
    %c0_i32 = arith.constant 0 : i32
    %c0_i32_0 = arith.constant 0 : i32
    return %arg0, %c0_i32 : i32, i32
  }
  func.func @transform_2(%arg0: i32) -> (i32, i32, i32) {
    %c0_i32 = arith.constant 0 : i32
    %c0_i32_0 = arith.constant 0 : i32
    %c0_i32_1 = arith.constant 0 : i32
    %c0_i32_2 = arith.constant 0 : i32
    return %c0_i32, %c0_i32_0, %c0_i32_1 : i32, i32, i32
  }
  func.func @transform_3(%arg0: i32) -> (i32, i32) {
    %c0_i32 = arith.constant 0 : i32
    %c0_i32_0 = arith.constant 0 : i32
    %c0_i32_1 = arith.constant 0 : i32
    return %c0_i32, %c0_i32_0 : i32, i32
  }
  func.func @transform_4(%arg0: i32) -> (i32, i32) {
    %c0_i32 = arith.constant 0 : i32
    %c0_i32_0 = arith.constant 0 : i32
    %c0_i32_1 = arith.constant 0 : i32
    return %c0_i32, %c0_i32_0 : i32, i32
  }
  func.func @transform_5(%arg0: i32) -> (i32, i32) {
    %c0_i32 = arith.constant 0 : i32
    %c0_i32_0 = arith.constant 0 : i32
    %c0_i32_1 = arith.constant 0 : i32
    return %c0_i32, %c0_i32_0 : i32, i32
  }
  func.func @transform_6(%arg0: i32) -> (i32, i32) {
    %c0_i32 = arith.constant 0 : i32
    %c0_i32_0 = arith.constant 0 : i32
    %c0_i32_1 = arith.constant 0 : i32
    return %c0_i32, %c0_i32_0 : i32, i32
  }
  func.func @transform_7(%arg0: i32) -> (i32, i32) {
    %c0_i32 = arith.constant 0 : i32
    %c0_i32_0 = arith.constant 0 : i32
    %c0_i32_1 = arith.constant 0 : i32
    return %c0_i32, %c0_i32_0 : i32, i32
  }
  func.func @transform_8(%arg0: i32) -> (i32, i32) {
    %c0_i32 = arith.constant 0 : i32
    %c0_i32_0 = arith.constant 0 : i32
    return %arg0, %c0_i32 : i32, i32
  }
}

module attributes {stable_mosaic.version = 11 : i64} {
  func.func @kernel(%arg0: i32, %arg1: memref<1x4x6xf32, #tpu.memory_space<vmem>>, %arg2: memref<8x6xf32, #tpu.memory_space<vmem>>, %arg3: memref<3x6x128xbf16, #tpu.memory_space<vmem>>, %arg4: memref<1x128xf32, #tpu.memory_space<vmem>>, %arg5: memref<128x128xbf16, #tpu.memory_space<vmem>>, %arg6: memref<1x128xf32, #tpu.memory_space<vmem>>, %arg7: memref<128x128xbf16, #tpu.memory_space<vmem>>, %arg8: memref<1x128xf32, #tpu.memory_space<vmem>>, %arg9: memref<8x128xf32, #tpu.memory_space<vmem>>) attributes {dimension_semantics = [#tpu.dimension_semantics<parallel>], iteration_bounds = array<i64: 1>, scalar_prefetch = 0 : i64, scratch_operands = 0 : i64, tpu.core_type = #tpu.core_type<tc>, window_params = [{transform_indices = @transform_0, window_bounds = array<i64: 1, 4, 6>}, {transform_indices = @transform_1, window_bounds = array<i64: 8, 6>}, {pipeline_mode = #tpu.pipeline_mode<synchronous>, transform_indices = @transform_2, window_bounds = array<i64: 3, 6, 128>}, {pipeline_mode = #tpu.pipeline_mode<synchronous>, transform_indices = @transform_3, window_bounds = array<i64: 1, 128>}, {pipeline_mode = #tpu.pipeline_mode<synchronous>, transform_indices = @transform_4, window_bounds = array<i64: 128, 128>}, {pipeline_mode = #tpu.pipeline_mode<synchronous>, transform_indices = @transform_5, window_bounds = array<i64: 1, 128>}, {pipeline_mode = #tpu.pipeline_mode<synchronous>, transform_indices = @transform_6, window_bounds = array<i64: 128, 128>}, {pipeline_mode = #tpu.pipeline_mode<synchronous>, transform_indices = @transform_7, window_bounds = array<i64: 1, 128>}, {transform_indices = @transform_8, window_bounds = array<i64: 8, 128>}]} {
    %c0 = arith.constant 0 : index
    %c0_0 = arith.constant 0 : index
    %c0_1 = arith.constant 0 : index
    %0 = vector.load %arg1[%c0, %c0_0, %c0_1] : memref<1x4x6xf32, #tpu.memory_space<vmem>>, vector<1x4x6xf32>
    %1 = vector.shape_cast %0 : vector<1x4x6xf32> to vector<4x6xf32>
    %c0_2 = arith.constant 0 : index
    %c0_3 = arith.constant 0 : index
    %2 = vector.load %arg2[%c0_2, %c0_3] : memref<8x6xf32, #tpu.memory_space<vmem>>, vector<8x6xf32>
    %3 = tpu.concatenate %1, %2 in 0 : vector<4x6xf32>, vector<8x6xf32> -> vector<12x6xf32>
    %4 = arith.truncf %3 : vector<12x6xf32> to vector<12x6xbf16>
    %5 = vector.extract_strided_slice %4 {offsets = [0, 0], sizes = [8, 6], strides = [1, 1]} : vector<12x6xbf16> to vector<8x6xbf16>
    %c0_4 = arith.constant 0 : index
    %c0_5 = arith.constant 0 : index
    %c0_6 = arith.constant 0 : index
    %6 = vector.load %arg3[%c0_4, %c0_5, %c0_6] : memref<3x6x128xbf16, #tpu.memory_space<vmem>>, vector<1x6x128xbf16>
    %7 = vector.shape_cast %6 : vector<1x6x128xbf16> to vector<6x128xbf16>
    %cst = arith.constant dense<0.000000e+00> : vector<8x128xf32>
    %8 = tpu.matmul %5, %7, %cst {dimension_numbers = #tpu.dot_dimension_numbers<[1], [0], [0], [1], [0, 0, 1, 1], [], []>} : vector<8x6xbf16>, vector<6x128xbf16>, vector<8x128xf32> -> vector<8x128xf32>
    %9 = vector.extract_strided_slice %4 {offsets = [2, 0], sizes = [8, 6], strides = [1, 1]} : vector<12x6xbf16> to vector<8x6xbf16>
    %c1 = arith.constant 1 : index
    %c0_7 = arith.constant 0 : index
    %c0_8 = arith.constant 0 : index
    %10 = vector.load %arg3[%c1, %c0_7, %c0_8] : memref<3x6x128xbf16, #tpu.memory_space<vmem>>, vector<1x6x128xbf16>
    %11 = vector.shape_cast %10 : vector<1x6x128xbf16> to vector<6x128xbf16>
    %cst_9 = arith.constant dense<0.000000e+00> : vector<8x128xf32>
    %12 = tpu.matmul %9, %11, %cst_9 {dimension_numbers = #tpu.dot_dimension_numbers<[1], [0], [0], [1], [0, 0, 1, 1], [], []>} : vector<8x6xbf16>, vector<6x128xbf16>, vector<8x128xf32> -> vector<8x128xf32>
    %13 = arith.addf %8, %12 : vector<8x128xf32>
    %14 = vector.extract_strided_slice %4 {offsets = [4, 0], sizes = [8, 6], strides = [1, 1]} : vector<12x6xbf16> to vector<8x6xbf16>
    %c2 = arith.constant 2 : index
    %c0_10 = arith.constant 0 : index
    %c0_11 = arith.constant 0 : index
    %15 = vector.load %arg3[%c2, %c0_10, %c0_11] : memref<3x6x128xbf16, #tpu.memory_space<vmem>>, vector<1x6x128xbf16>
    %16 = vector.shape_cast %15 : vector<1x6x128xbf16> to vector<6x128xbf16>
    %cst_12 = arith.constant dense<0.000000e+00> : vector<8x128xf32>
    %17 = tpu.matmul %14, %16, %cst_12 {dimension_numbers = #tpu.dot_dimension_numbers<[1], [0], [0], [1], [0, 0, 1, 1], [], []>} : vector<8x6xbf16>, vector<6x128xbf16>, vector<8x128xf32> -> vector<8x128xf32>
    %18 = arith.addf %13, %17 : vector<8x128xf32>
    %c0_13 = arith.constant 0 : index
    %c0_14 = arith.constant 0 : index
    %19 = vector.load %arg4[%c0_13, %c0_14] : memref<1x128xf32, #tpu.memory_space<vmem>>, vector<1x128xf32>
    %20 = vector.broadcast %19 : vector<1x128xf32> to vector<8x128xf32>
    %21 = arith.addf %18, %20 : vector<8x128xf32>
    %c0_15 = arith.constant 0 : index
    %c0_16 = arith.constant 0 : index
    %22 = vector.load %arg5[%c0_15, %c0_16] : memref<128x128xbf16, #tpu.memory_space<vmem>>, vector<128x128xbf16>
    %c0_17 = arith.constant 0 : index
    %c0_18 = arith.constant 0 : index
    %23 = vector.load %arg6[%c0_17, %c0_18] : memref<1x128xf32, #tpu.memory_space<vmem>>, vector<1x128xf32>
    %cst_19 = arith.constant 0.000000e+00 : f32
    %24 = vector.broadcast %cst_19 : f32 to vector<8x128xf32>
    %25 = arith.maximumf %21, %24 : vector<8x128xf32>
    %26 = arith.truncf %25 : vector<8x128xf32> to vector<8x128xbf16>
    %cst_20 = arith.constant dense<0.000000e+00> : vector<8x128xf32>
    %27 = tpu.matmul %26, %22, %cst_20 {dimension_numbers = #tpu.dot_dimension_numbers<[1], [0], [0], [1], [0, 0, 1, 1], [], []>} : vector<8x128xbf16>, vector<128x128xbf16>, vector<8x128xf32> -> vector<8x128xf32>
    %28 = vector.broadcast %23 : vector<1x128xf32> to vector<8x128xf32>
    %29 = arith.addf %27, %28 : vector<8x128xf32>
    %c0_21 = arith.constant 0 : index
    %c0_22 = arith.constant 0 : index
    %30 = vector.load %arg7[%c0_21, %c0_22] : memref<128x128xbf16, #tpu.memory_space<vmem>>, vector<128x128xbf16>
    %c0_23 = arith.constant 0 : index
    %c0_24 = arith.constant 0 : index
    %31 = vector.load %arg8[%c0_23, %c0_24] : memref<1x128xf32, #tpu.memory_space<vmem>>, vector<1x128xf32>
    %cst_25 = arith.constant 0.000000e+00 : f32
    %32 = vector.broadcast %cst_25 : f32 to vector<8x128xf32>
    %33 = arith.maximumf %29, %32 : vector<8x128xf32>
    %34 = arith.truncf %33 : vector<8x128xf32> to vector<8x128xbf16>
    %cst_26 = arith.constant dense<0.000000e+00> : vector<8x128xf32>
    %35 = tpu.matmul %34, %30, %cst_26 {dimension_numbers = #tpu.dot_dimension_numbers<[1], [0], [0], [1], [0, 0, 1, 1], [], []>} : vector<8x128xbf16>, vector<128x128xbf16>, vector<8x128xf32> -> vector<8x128xf32>
    %36 = vector.broadcast %31 : vector<1x128xf32> to vector<8x128xf32>
    %37 = arith.addf %35, %36 : vector<8x128xf32>
    %c0_27 = arith.constant 0 : index
    %c0_28 = arith.constant 0 : index
    %38 = vector.load %arg9[%c0_27, %c0_28] : memref<8x128xf32, #tpu.memory_space<vmem>>, vector<8x128xf32>
    tpu.vector_store %arg9[%c0_27, %c0_28], %37 {strides = array<i32>} : memref<8x128xf32, #tpu.memory_space<vmem>>, vector<8x128xf32>,
    return
  }
  func.func @transform_0(%arg0: i32) -> (i32, i32, i32) {
    %c0_i32 = arith.constant 0 : i32
    %c0_i32_0 = arith.constant 0 : i32
    %c0_i32_1 = arith.constant 0 : i32
    return %arg0, %c0_i32, %c0_i32_0 : i32, i32, i32
  }
  func.func @transform_1(%arg0: i32) -> (i32, i32) {
    %c0_i32 = arith.constant 0 : i32
    %c0_i32_0 = arith.constant 0 : i32
    return %arg0, %c0_i32 : i32, i32
  }
  func.func @transform_2(%arg0: i32) -> (i32, i32, i32) {
    %c0_i32 = arith.constant 0 : i32
    %c0_i32_0 = arith.constant 0 : i32
    %c0_i32_1 = arith.constant 0 : i32
    %c0_i32_2 = arith.constant 0 : i32
    return %c0_i32, %c0_i32_0, %c0_i32_1 : i32, i32, i32
  }
  func.func @transform_3(%arg0: i32) -> (i32, i32) {
    %c0_i32 = arith.constant 0 : i32
    %c0_i32_0 = arith.constant 0 : i32
    %c0_i32_1 = arith.constant 0 : i32
    return %c0_i32, %c0_i32_0 : i32, i32
  }
  func.func @transform_4(%arg0: i32) -> (i32, i32) {
    %c0_i32 = arith.constant 0 : i32
    %c0_i32_0 = arith.constant 0 : i32
    %c0_i32_1 = arith.constant 0 : i32
    return %c0_i32, %c0_i32_0 : i32, i32
  }
  func.func @transform_5(%arg0: i32) -> (i32, i32) {
    %c0_i32 = arith.constant 0 : i32
    %c0_i32_0 = arith.constant 0 : i32
    %c0_i32_1 = arith.constant 0 : i32
    return %c0_i32, %c0_i32_0 : i32, i32
  }
  func.func @transform_6(%arg0: i32) -> (i32, i32) {
    %c0_i32 = arith.constant 0 : i32
    %c0_i32_0 = arith.constant 0 : i32
    %c0_i32_1 = arith.constant 0 : i32
    return %c0_i32, %c0_i32_0 : i32, i32
  }
  func.func @transform_7(%arg0: i32) -> (i32, i32) {
    %c0_i32 = arith.constant 0 : i32
    %c0_i32_0 = arith.constant 0 : i32
    %c0_i32_1 = arith.constant 0 : i32
    return %c0_i32, %c0_i32_0 : i32, i32
  }
  func.func @transform_8(%arg0: i32) -> (i32, i32) {
    %c0_i32 = arith.constant 0 : i32
    %c0_i32_0 = arith.constant 0 : i32
    return %arg0, %c0_i32 : i32, i32
  }
}

</mosaic_0001>

<bundles_post_ra>
// kernel: tpu_custom_call.1
= control target key start
LH: loop header
LB: loop body
LE: loop exit
PB: predicated region body
PF: predicated region fallthrough
CT: control target
= control target key end

     0   :  { %13 = vsyncpa [#allocation3], 0  ;;  %s954_s0 = inlined_call_operand.hbm [shape: f32[1,4,6], index: 0, kind: input, shape index: {}]   ;;  %s955_s1 = inlined_call_operand.hbm [shape: f32[8,6], index: 1, kind: input, shape index: {}]   ;;  %s956_s2 = inlined_call_operand.hbm [shape: bf16[3,6,128], index: 2, kind: input, shape index: {}]   ;;  %s957_s3 = inlined_call_operand.vmem [shape: f32[1,128], index: 3, kind: input, shape index: {}]   ;;  %s958_s4 = inlined_call_operand.hbm [shape: bf16[128,128], index: 4, kind: input, shape index: {}]   ;;  %s959_s5 = inlined_call_operand.vmem [shape: f32[1,128], index: 5, kind: input, shape index: {}]   ;;  %s960_s6 = inlined_call_operand.hbm [shape: bf16[128,128], index: 6, kind: input, shape index: {}]   ;;  %s961_s7 = inlined_call_operand.vmem [shape: f32[1,128], index: 7, kind: input, shape index: {}]   ;;  %s962_s8 = inlined_call_operand.hbm [shape: f32[8,128], index: 8, kind: output, shape index: {}]  }
   0x1   :  { %14 = vsyncpa [#allocation6], 0 }
   0x2   :  { %15 = vsyncpa [#allocation9], 0 }
   0x3   :  { %16 = vsyncpa [#allocation4], 0  ;;  %s774_s27 = smov [#allocation5]   ;;  %s634_s9 = scalar_lea.hbm %s955_s1, 128 }
   0x4   :  { %s33_s28 = sshll.u32 %s774_s27, 4  ;;  %p635_p0 = scmp.ne.s32.totalorder %s955_s1, %s634_s9  ;;  %s34_s28 = int_to_ptr.vmem [resolvable:$true] %s33_s28 }
   0x5   :  { %p638_p1 = scmp.lt.u32.totalorder %s634_s9, %s955_s1 }
   0x7   :  { %p640_p2 = pnand %p638_p1, %p635_p0 }
   0x9   :  { %643 = shalt.err (!%p640_p2)
}
   0xa   :  { %s644_s14 = scalar_lea.vmem %s34_s28, 128  ;;  %p649_p4 = scmp.lt.s32.totalorder %s34_s28, %s34_s28 }
   0xb   :  { %p645_p3 = scmp.ne.s32.totalorder %s34_s28, %s644_s14  ;;  %p650_p5 = scmp.lt.s32.totalorder %s644_s14, %s644_s14 }
   0xd   :  { %p651_p6 = por %p650_p5, %p649_p4 }
   0xf   :  { %p652_p7 = pnand %p651_p6, %p645_p3 }
  0x11   :  { %655 = shalt.err (!%p652_p7)
}
  0x12   :  { %36 = dma.hbm_to_vmem [thread:$0]  %s955_s1, 128, %s34_s28, [#allocation6]  }
  0x13   :  { %s775_s17 = smov [#allocation8]   ;;  %s776_s19 = smov [#allocation2]  }
  0x14   :  { %s56_s18 = sshll.u32 %s775_s17, 4  ;;  %s23_s20 = sshll.u32 %s776_s19, 4  ;;  %s57_s18 = int_to_ptr.vmem [resolvable:$true] %s56_s18  ;;  %s24_s20 = int_to_ptr.vmem [resolvable:$true] %s23_s20 }
  0x15   :  { %s656_s23 = scalar_lea.hbm %s958_s4, 1024 }
  0x16   :  { %p657_p8 = scmp.ne.s32.totalorder %s958_s4, %s656_s23  ;;  %p660_p9 = scmp.lt.u32.totalorder %s656_s23, %s958_s4 }
  0x18   :  { %p662_p10 = pnand %p660_p9, %p657_p8 }
  0x1a   :  { %665 = shalt.err (!%p662_p10)
}
  0x1b   :  { %s666_s1 = scalar_lea.vmem %s57_s18, 1024  ;;  %p671_p12 = scmp.lt.s32.totalorder %s57_s18, %s57_s18 }
  0x1c   :  { %p667_p11 = scmp.ne.s32.totalorder %s57_s18, %s666_s1  ;;  %p672_p13 = scmp.lt.s32.totalorder %s666_s1, %s666_s1 }
  0x1e   :  { %p673_p0 = por %p672_p13, %p671_p12 }
  0x20   :  { %p674_p1 = pnand %p673_p0, %p667_p11 }
  0x22   :  { %677 = shalt.err (!%p674_p1)
}
  0x23   :  { %s777_s28 = smov 64   ;;  %s778_s29 = smov 4  }
  0x24   :  { %62 = dma.hbm_to_vmem [thread:$0]  %s958_s4, 1024, %s57_s18, [#allocation9], %s777_s28, %s777_s28, %s778_s29  }
  0x25   :  { %s678_s12 = scalar_lea.hbm %s954_s0, 64 }
  0x26   :  { %p679_p2 = scmp.ne.s32.totalorder %s954_s0, %s678_s12  ;;  %p682_p3 = scmp.lt.u32.totalorder %s678_s12, %s954_s0 }
  0x28   :  { %p684_p4 = pnand %p682_p3, %p679_p2 }
  0x2a   :  { %687 = shalt.err (!%p684_p4)
}
  0x2b   :  { %s688_s17 = scalar_lea.vmem %s24_s20, 64  ;;  %p693_p6 = scmp.lt.s32.totalorder %s24_s20, %s24_s20 }
  0x2c   :  { %p689_p5 = scmp.ne.s32.totalorder %s24_s20, %s688_s17  ;;  %p694_p7 = scmp.lt.s32.totalorder %s688_s17, %s688_s17 }
  0x2e   :  { %p695_p8 = por %p694_p7, %p693_p6 }
  0x30   :  { %p696_p9 = pnand %p695_p8, %p689_p5 }
  0x32   :  { %699 = shalt.err (!%p696_p9)
}
  0x33   :  { %26 = dma.hbm_to_vmem [thread:$0]  %s954_s0, 64, %s24_s20, [#allocation3]  }
  0x34   :  { %s779_s19 = smov [#allocation7]   ;;  %s780_s22 = smov [#allocation10]  }
  0x35   :  { %s42_s21 = sshll.u32 %s779_s19, 4  ;;  %s70_s23 = sshll.u32 %s780_s22, 4  ;;  %s43_s21 = int_to_ptr.vmem [resolvable:$true] %s42_s21  ;;  %s71_s23 = int_to_ptr.vmem [resolvable:$true] %s70_s23 }
  0x36   :  { %s700_s26 = scalar_lea.hbm %s956_s2, 192 }
  0x37   :  { %p701_p10 = scmp.ne.s32.totalorder %s956_s2, %s700_s26  ;;  %p704_p11 = scmp.lt.u32.totalorder %s700_s26, %s956_s2 }
  0x39   :  { %p706_p12 = pnand %p704_p11, %p701_p10 }
  0x3b   :  { %709 = shalt.err (!%p706_p12)
}
  0x3c   :  { %s710_s0 = scalar_lea.vmem %s43_s21, 192  ;;  %p715_p0 = scmp.lt.s32.totalorder %s43_s21, %s43_s21 }
  0x3d   :  { %p711_p13 = scmp.ne.s32.totalorder %s43_s21, %s710_s0  ;;  %p716_p1 = scmp.lt.s32.totalorder %s710_s0, %s710_s0 }
  0x3f   :  { %p717_p2 = por %p716_p1, %p715_p0 }
  0x41   :  { %p718_p3 = pnand %p717_p2, %p711_p13 }
  0x43   :  { %721 = shalt.err (!%p718_p3)
}
  0x44   :  { %48 = dma.hbm_to_vmem [thread:$0]  %s956_s2, 192, %s43_s21, [#allocation6], %s777_s28, %s777_s28, %s778_s29  }
  0x45   :  { %s722_s13 = scalar_lea.hbm %s960_s6, 1024 }
  0x46   :  { %p723_p4 = scmp.ne.s32.totalorder %s960_s6, %s722_s13  ;;  %p726_p5 = scmp.lt.u32.totalorder %s722_s13, %s960_s6 }
  0x48   :  { %p728_p6 = pnand %p726_p5, %p723_p4 }
  0x4a   :  { %731 = shalt.err (!%p728_p6)
}
  0x4b   :  { %s732_s4 = scalar_lea.vmem %s71_s23, 1024  ;;  %p737_p8 = scmp.lt.s32.totalorder %s71_s23, %s71_s23 }
  0x4c   :  { %p733_p7 = scmp.ne.s32.totalorder %s71_s23, %s732_s4  ;;  %p738_p9 = scmp.lt.s32.totalorder %s732_s4, %s732_s4 }
  0x4e   :  { %p739_p10 = por %p738_p9, %p737_p8 }
  0x50   :  { %p740_p11 = pnand %p739_p10, %p733_p7 }
  0x52   :  { %743 = shalt.err (!%p740_p11)
}
  0x53   :  { %76 = dma.hbm_to_vmem [thread:$0]  %s960_s6, 1024, %s71_s23, [#allocation9], %s777_s28, %s777_s28, %s778_s29  }
  0x54   :  { %766 = dma.done.wait [#allocation3], 64  }
  0x55   :  { %767 = vsyncadd [#allocation3], 4294967232 }
  0x56   :  { %768 = dma.done.wait [#allocation6], 320  }
  0x57   :  { %769 = vsyncadd [#allocation6], 4294966976 }
  0x58   :  { %770 = dma.done.wait [#allocation9], 2048  }
  0x59   :  { %771 = vsyncadd [#allocation9], 4294965248  ;;  %v781_v0 = vmov 0.0   ;;  %vm782_vm0 = vmmov 0   ;;  %vm112_vm1 = vcmask 1042432   ;;  %v96_v6 = vld [vmem:[#allocation5] sm:$0xff] }
  0x5a   :  { %550 = vmatprep.subr.bf16.mxu0 %v781_v0  ;;  %556 = vmatprep.subr.bf16.mxu1 %v781_v0  ;;  %v105_v1 = vld [vmem:[#allocation7 + $0x4] sm:$0x7]  ;;  %v103_v2 = vld [vmem:[#allocation7] sm:$0x7]  ;;  %v95_v3 = vld [vmem:[#allocation2] sm:$0xf] }
  0x5b   :  { %552 = vmatprep.mubr.msk.bf16.mxu0 %vm782_vm0, %v781_v0  ;;  %558 = vmatprep.mubr.msk.bf16.mxu1 %vm782_vm0, %v781_v0  ;;  %v114_v4 = vsel %vm112_vm1, %v105_v1, 0  ;;  %v160_v5 = vsel %vm112_vm1, %v103_v2, 0  ;;  %vm100_vm2 = vcmask 1043456   ;;  %v203_v7 = vld [vmem:[#allocation7 + $0x8] sm:$0x7]  ;;  %v98_v8 = vrot.slane %v96_v6, 4 }
  0x5c   :  { %551 = vmatpush3.bf16.msra.mxu0 %v114_v4  ;;  %557 = vmatpush3.bf16.msra.mxu1 %v160_v5  ;;  %vm108_vm3 = vcmask 48128   ;;  %v618_v10 = vld [vmem:[#allocation8] sm:$0xff]   ;;  %v209_v12 = vsel %vm112_vm1, %v203_v7, 0  ;;  %v619_v13 = vld [vmem:[#allocation8 + $0x8] sm:$0xff]   ;;  %v620_v16 = vld [vmem:[#allocation8 + $0x10] sm:$0xff]   ;;  %s783_s22 = smov [#allocation11]  }
  0x5d   :  { %562 = vmatprep.subr.bf16.mxu0 %v781_v0  ;;  %568 = vmatprep.subr.bf16.mxu1 %v781_v0  ;;  %v101_v9 = vsel %vm100_vm2, %v95_v3, %v98_v8  ;;  %v621_v17 = vld [vmem:[#allocation8 + $0x18] sm:$0xff]   ;;  %v622_v18 = vld [vmem:[#allocation8 + $0x20] sm:$0xff]   ;;  %v623_v19 = vld [vmem:[#allocation8 + $0x28] sm:$0xff]   ;;  %s493_s23 = sshll.u32 %s783_s22, 4  ;;  %s494_s23 = int_to_ptr.vmem [resolvable:$true] %s493_s23 }
  0x5e   :  { %v102_v11 = vpack.c.bf16 %v98_v8, %v101_v9  ;;  %v624_v20 = vld [vmem:[#allocation8 + $0x30] sm:$0xff]   ;;  %v625_v21 = vld [vmem:[#allocation8 + $0x38] sm:$0xff]   ;;  %v626_v22 = vld [vmem:[#allocation10] sm:$0xff]   ;;  %p749_p13 = scmp.lt.s32.totalorder %s494_s23, %s494_s23 }
  0x5f   :  { %v627_v23 = vld [vmem:[#allocation10 + $0x8] sm:$0xff]   ;;  %v628_v24 = vld [vmem:[#allocation10 + $0x10] sm:$0xff]   ;;  %v629_v25 = vld [vmem:[#allocation10 + $0x18] sm:$0xff]  }
  0x60   :  { %v107_v14 = vrot.slane %v102_v11, 1  ;;  %559 = vmatmul.mubr.msk.bf16.vlgmr.msra.gmra.mrb[0].mxu1 %vm108_vm3, %v102_v11  ;;  %v204_v15 = vrot.slane %v102_v11, 2  ;;  %v630_v26 = vld [vmem:[#allocation10 + $0x20] sm:$0xff]   ;;  %v631_v27 = vld [vmem:[#allocation10 + $0x28] sm:$0xff]   ;;  %v632_v46 = vld [vmem:[#allocation10 + $0x30] sm:$0xff]  }
  0x61   :  { %569 = vmatpush3.bf16.msra.mxu1 %v618_v10  ;;  %584 = vmatprep.mubr.msk.bf16.mxu1 %vm782_vm0, %v781_v0  ;;  %v507_v38 = vld [vmem:[%s957_s3] ss:$0 sm:$0xff]  ;;  %v633_v47 = vld [vmem:[#allocation10 + $0x38] sm:$0xff]  }
  0x62   :  { %553 = vmatmul.mubr.msk.bf16.vlgmr.msra.gmra.mrb[0].mxu0 %vm108_vm3, %v107_v14  ;;  %570 = vmatprep.subr.bf16.mxu1 %v781_v0  ;;  %v508_v48 = vld [vmem:[%s959_s5] ss:$0 sm:$0xff]  ;;  %s744_s5 = scalar_lea.vmem %s494_s23, 128 }
  0x63   :  { %563 = vmatpush3.bf16.msra.mxu0 %v209_v12  ;;  %564 = vmatprep.mubr.msk.bf16.mxu0 %vm782_vm0, %v781_v0  ;;  %v517_v56 = vld [vmem:[%s961_s7] ss:$0 sm:$0xff]  ;;  %p745_p12 = scmp.ne.s32.totalorder %s494_s23, %s744_s5  ;;  %p750_p0 = scmp.lt.s32.totalorder %s744_s5, %s744_s5 }
  0x64   :  { %588 = vmatprep.subr.bf16.mxu0 %v781_v0 }
  0x65   :  { %571 = vmatpush3.bf16.msra.mxu1 %v619_v13  ;;  %p751_p1 = por %p750_p0, %p749_p13 }
  0x66   :  { %572 = vmatprep.subr.bf16.mxu1 %v781_v0 }
  0x67   :  { %p752_p2 = pnand %p751_p1, %p745_p12 }
  0x69   :  { %573 = vmatpush3.bf16.msra.mxu1 %v620_v16 }
  0x6a   :  { %565 = vmatmul.mubr.msk.bf16.vlgmr.msra.gmra.mrb[4].mxu0 %vm108_vm3, %v204_v15  ;;  %574 = vmatprep.subr.bf16.mxu1 %v781_v0 }
  0x6b   :  { %604 = vmatprep.mubr.msk.bf16.mxu0 %vm782_vm0, %v781_v0  ;;  %589 = vmatpush3.bf16.msra.mxu0 %v626_v22 }
  0x6c   :  { %590 = vmatprep.subr.bf16.mxu0 %v781_v0 }
  0x6d   :  { %575 = vmatpush3.bf16.msra.mxu1 %v621_v17 }
  0x6e   :  { %576 = vmatprep.subr.bf16.mxu1 %v781_v0 }
  0x6f   :  { %591 = vmatpush3.bf16.msra.mxu0 %v627_v23 }
  0x70   :  { %592 = vmatprep.subr.bf16.mxu0 %v781_v0 }
  0x71   :  { %577 = vmatpush3.bf16.msra.mxu1 %v622_v18 }
  0x72   :  { %578 = vmatprep.subr.bf16.mxu1 %v781_v0 }
  0x73   :  { %593 = vmatpush3.bf16.msra.mxu0 %v628_v24 }
  0x74   :  { %594 = vmatprep.subr.bf16.mxu0 %v781_v0 }
  0x75   :  { %579 = vmatpush3.bf16.msra.mxu1 %v623_v19 }
  0x76   :  { %580 = vmatprep.subr.bf16.mxu1 %v781_v0 }
  0x77   :  { %595 = vmatpush3.bf16.msra.mxu0 %v629_v25 }
  0x78   :  { %596 = vmatprep.subr.bf16.mxu0 %v781_v0 }
  0x79   :  { %581 = vmatpush3.bf16.msra.mxu1 %v624_v20 }
  0x7a   :  { %582 = vmatprep.subr.bf16.mxu1 %v781_v0 }
  0x7b   :  { %597 = vmatpush3.bf16.msra.mxu0 %v630_v26 }
  0x7c   :  { %598 = vmatprep.subr.bf16.mxu0 %v781_v0 }
  0x7d   :  { %583 = vmatpush3.bf16.msra.mxu1 %v625_v21 }
  0x7f   :  { %599 = vmatpush3.bf16.msra.mxu0 %v631_v27 }
  0x80   :  { %600 = vmatprep.subr.bf16.mxu0 %v781_v0 }
  0x83   :  { %601 = vmatpush3.bf16.msra.mxu0 %v632_v46 }
  0x84   :  { %602 = vmatprep.subr.bf16.mxu0 %v781_v0 }
  0x87   :  { %603 = vmatpush3.bf16.msra.mxu0 %v633_v47 }
 0x133   :  { %v196_v28 = vpop.f32.mrb[0].mxu1 }
 0x134   :  { %v560_v29 = vpop.f32.mrb[1].mxu1 }
 0x135   :  { %v150_v30 = vpop.f32.mrb[0].mxu0  ;;  %v199_v31 = vpop.f32.mrb[2].mxu1 }
 0x136   :  { %v197_v32 = vadd.f32 %v196_v28, %v150_v30  ;;  %v554_v33 = vpop.f32.mrb[1].mxu0  ;;  %v561_v34 = vpop.f32.mrb[3].mxu1 }
 0x137   :  { %v153_v35 = vpop.f32.mrb[2].mxu0 }
 0x138   :  { %v555_v36 = vpop.f32.mrb[3].mxu0 }
 0x13d   :  { %v245_v37 = vpop.f32.mrb[4].mxu0 }
 0x13e   :  { %v251_v39 = vadd.f32 %v245_v37, %v197_v32  ;;  %v566_v40 = vpop.f32.mrb[5].mxu0 }
 0x13f   :  { %v248_v41 = vpop.f32.mrb[6].mxu0 }
 0x140   :  { %v259_v42 = vadd.f32 %v507_v38, %v251_v39  ;;  %v567_v43 = vpop.f32.mrb[7].mxu0 }
 0x142   :  { %v277_v44 = vmax.f32 %v259_v42, 0.0 }
 0x144   :  { %v278_v45 = vpack.c.bf16 %v277_v44, %v277_v44 }
 0x146   :  { %585 = vmatmul.mubr.bf16.vlgmr.msra.gmra.mrb[4].mxu1 %v278_v45 }
 0x219   :  { %v367_v49 = vpop.f32.mrb[4].mxu1 }
 0x21a   :  { %v368_v50 = vadd.f32 %v508_v48, %v367_v49  ;;  %v586_v51 = vpop.f32.mrb[5].mxu1 }
 0x21b   :  { %v370_v52 = vpop.f32.mrb[6].mxu1 }
 0x21c   :  { %v390_v53 = vmax.f32 %v368_v50, 0.0  ;;  %v587_v54 = vpop.f32.mrb[7].mxu1 }
 0x21e   :  { %v391_v55 = vpack.c.bf16 %v390_v53, %v390_v53 }
 0x220   :  { %605 = vmatmul.mubr.bf16.vlgmr.msra.gmra.mrb[8].mxu0 %v391_v55 }
 0x2f3   :  { %v480_v57 = vpop.f32.mrb[8].mxu0 }
 0x2f4   :  { %v481_v58 = vadd.f32 %v517_v56, %v480_v57  ;;  %v606_v59 = vpop.f32.mrb[9].mxu0 }
 0x2f5   :  { %v483_v60 = vpop.f32.mrb[10].mxu0 }
 0x2f6   :  { %486 = vst [vmem:[#allocation11] sm:$0xff] %v481_v58  ;;  %v607_v61 = vpop.f32.mrb[11].mxu0 }
 0x2f7   :  { %755 = shalt.err (!%p752_p2)
}
 0x2f8   :  { %s756_s7 = scalar_lea.hbm %s962_s8, 128 }
 0x2f9   :  { %p757_p3 = scmp.ne.s32.totalorder %s962_s8, %s756_s7  ;;  %p760_p4 = scmp.lt.u32.totalorder %s756_s7, %s962_s8 }
 0x2fb   :  { %p762_p5 = pnand %p760_p4, %p757_p3 }
 0x2fd   :  { %765 = shalt.err (!%p762_p5)
}
 0x2fe   :  { %496 = dma.vmem_to_hbm [thread:$0]  %s494_s23, 128, %s962_s8, [#allocation4]  }
 0x2ff   :  { %772 = dma.done.wait [#allocation4], 128  }
 0x300   :  { %773 = vsyncadd [#allocation4], 4294967168 }
 0x301   :  { %500 = vsyncpa [#allocation3], 1 }
 0x302   :  { %501 = vsyncpa [#allocation6], 1 }
 0x303   :  { %502 = vsyncpa [#allocation9], 1 }
 0x304   :  { %503 = vsyncpa [#allocation4], 1 }

// kernel: tpu_custom_call.1
= control target key start
LH: loop header
LB: loop body
LE: loop exit
PB: predicated region body
PF: predicated region fallthrough
CT: control target
= control target key end

     0   :  { %13 = vsyncpa [#allocation3], 0  ;;  %s954_s0 = inlined_call_operand.hbm [shape: f32[1,4,6], index: 0, kind: input, shape index: {}]   ;;  %s955_s1 = inlined_call_operand.hbm [shape: f32[8,6], index: 1, kind: input, shape index: {}]   ;;  %s956_s2 = inlined_call_operand.hbm [shape: bf16[3,6,128], index: 2, kind: input, shape index: {}]   ;;  %s957_s3 = inlined_call_operand.vmem [shape: f32[1,128], index: 3, kind: input, shape index: {}]   ;;  %s958_s4 = inlined_call_operand.hbm [shape: bf16[128,128], index: 4, kind: input, shape index: {}]   ;;  %s959_s5 = inlined_call_operand.vmem [shape: f32[1,128], index: 5, kind: input, shape index: {}]   ;;  %s960_s6 = inlined_call_operand.hbm [shape: bf16[128,128], index: 6, kind: input, shape index: {}]   ;;  %s961_s7 = inlined_call_operand.vmem [shape: f32[1,128], index: 7, kind: input, shape index: {}]   ;;  %s962_s8 = inlined_call_operand.hbm [shape: f32[8,128], index: 8, kind: output, shape index: {}]  }
   0x1   :  { %14 = vsyncpa [#allocation6], 0 }
   0x2   :  { %15 = vsyncpa [#allocation9], 0 }
   0x3   :  { %16 = vsyncpa [#allocation4], 0  ;;  %s774_s27 = smov [#allocation5]   ;;  %s634_s9 = scalar_lea.hbm %s955_s1, 128 }
   0x4   :  { %s33_s28 = sshll.u32 %s774_s27, 4  ;;  %p635_p0 = scmp.ne.s32.totalorder %s955_s1, %s634_s9  ;;  %s34_s28 = int_to_ptr.vmem [resolvable:$true] %s33_s28 }
   0x5   :  { %p638_p1 = scmp.lt.u32.totalorder %s634_s9, %s955_s1 }
   0x7   :  { %p640_p2 = pnand %p638_p1, %p635_p0 }
   0x9   :  { %643 = shalt.err (!%p640_p2)
}
   0xa   :  { %s644_s14 = scalar_lea.vmem %s34_s28, 128  ;;  %p649_p4 = scmp.lt.s32.totalorder %s34_s28, %s34_s28 }
   0xb   :  { %p645_p3 = scmp.ne.s32.totalorder %s34_s28, %s644_s14  ;;  %p650_p5 = scmp.lt.s32.totalorder %s644_s14, %s644_s14 }
   0xd   :  { %p651_p6 = por %p650_p5, %p649_p4 }
   0xf   :  { %p652_p7 = pnand %p651_p6, %p645_p3 }
  0x11   :  { %655 = shalt.err (!%p652_p7)
}
  0x12   :  { %36 = dma.hbm_to_vmem [thread:$0]  %s955_s1, 128, %s34_s28, [#allocation6]  }
  0x13   :  { %s775_s17 = smov [#allocation8]   ;;  %s776_s19 = smov [#allocation2]  }
  0x14   :  { %s56_s18 = sshll.u32 %s775_s17, 4  ;;  %s23_s20 = sshll.u32 %s776_s19, 4  ;;  %s57_s18 = int_to_ptr.vmem [resolvable:$true] %s56_s18  ;;  %s24_s20 = int_to_ptr.vmem [resolvable:$true] %s23_s20 }
  0x15   :  { %s656_s23 = scalar_lea.hbm %s958_s4, 1024 }
  0x16   :  { %p657_p8 = scmp.ne.s32.totalorder %s958_s4, %s656_s23  ;;  %p660_p9 = scmp.lt.u32.totalorder %s656_s23, %s958_s4 }
  0x18   :  { %p662_p10 = pnand %p660_p9, %p657_p8 }
  0x1a   :  { %665 = shalt.err (!%p662_p10)
}
  0x1b   :  { %s666_s1 = scalar_lea.vmem %s57_s18, 1024  ;;  %p671_p12 = scmp.lt.s32.totalorder %s57_s18, %s57_s18 }
  0x1c   :  { %p667_p11 = scmp.ne.s32.totalorder %s57_s18, %s666_s1  ;;  %p672_p13 = scmp.lt.s32.totalorder %s666_s1, %s666_s1 }
  0x1e   :  { %p673_p0 = por %p672_p13, %p671_p12 }
  0x20   :  { %p674_p1 = pnand %p673_p0, %p667_p11 }
  0x22   :  { %677 = shalt.err (!%p674_p1)
}
  0x23   :  { %s777_s28 = smov 64   ;;  %s778_s29 = smov 4  }
  0x24   :  { %62 = dma.hbm_to_vmem [thread:$0]  %s958_s4, 1024, %s57_s18, [#allocation9], %s777_s28, %s777_s28, %s778_s29  }
  0x25   :  { %s678_s12 = scalar_lea.hbm %s954_s0, 64 }
  0x26   :  { %p679_p2 = scmp.ne.s32.totalorder %s954_s0, %s678_s12  ;;  %p682_p3 = scmp.lt.u32.totalorder %s678_s12, %s954_s0 }
  0x28   :  { %p684_p4 = pnand %p682_p3, %p679_p2 }
  0x2a   :  { %687 = shalt.err (!%p684_p4)
}
  0x2b   :  { %s688_s17 = scalar_lea.vmem %s24_s20, 64  ;;  %p693_p6 = scmp.lt.s32.totalorder %s24_s20, %s24_s20 }
  0x2c   :  { %p689_p5 = scmp.ne.s32.totalorder %s24_s20, %s688_s17  ;;  %p694_p7 = scmp.lt.s32.totalorder %s688_s17, %s688_s17 }
  0x2e   :  { %p695_p8 = por %p694_p7, %p693_p6 }
  0x30   :  { %p696_p9 = pnand %p695_p8, %p689_p5 }
  0x32   :  { %699 = shalt.err (!%p696_p9)
}
  0x33   :  { %26 = dma.hbm_to_vmem [thread:$0]  %s954_s0, 64, %s24_s20, [#allocation3]  }
  0x34   :  { %s779_s19 = smov [#allocation7]   ;;  %s780_s22 = smov [#allocation10]  }
  0x35   :  { %s42_s21 = sshll.u32 %s779_s19, 4  ;;  %s70_s23 = sshll.u32 %s780_s22, 4  ;;  %s43_s21 = int_to_ptr.vmem [resolvable:$true] %s42_s21  ;;  %s71_s23 = int_to_ptr.vmem [resolvable:$true] %s70_s23 }
  0x36   :  { %s700_s26 = scalar_lea.hbm %s956_s2, 192 }
  0x37   :  { %p701_p10 = scmp.ne.s32.totalorder %s956_s2, %s700_s26  ;;  %p704_p11 = scmp.lt.u32.totalorder %s700_s26, %s956_s2 }
  0x39   :  { %p706_p12 = pnand %p704_p11, %p701_p10 }
  0x3b   :  { %709 = shalt.err (!%p706_p12)
}
  0x3c   :  { %s710_s0 = scalar_lea.vmem %s43_s21, 192  ;;  %p715_p0 = scmp.lt.s32.totalorder %s43_s21, %s43_s21 }
  0x3d   :  { %p711_p13 = scmp.ne.s32.totalorder %s43_s21, %s710_s0  ;;  %p716_p1 = scmp.lt.s32.totalorder %s710_s0, %s710_s0 }
  0x3f   :  { %p717_p2 = por %p716_p1, %p715_p0 }
  0x41   :  { %p718_p3 = pnand %p717_p2, %p711_p13 }
  0x43   :  { %721 = shalt.err (!%p718_p3)
}
  0x44   :  { %48 = dma.hbm_to_vmem [thread:$0]  %s956_s2, 192, %s43_s21, [#allocation6], %s777_s28, %s777_s28, %s778_s29  }
  0x45   :  { %s722_s13 = scalar_lea.hbm %s960_s6, 1024 }
  0x46   :  { %p723_p4 = scmp.ne.s32.totalorder %s960_s6, %s722_s13  ;;  %p726_p5 = scmp.lt.u32.totalorder %s722_s13, %s960_s6 }
  0x48   :  { %p728_p6 = pnand %p726_p5, %p723_p4 }
  0x4a   :  { %731 = shalt.err (!%p728_p6)
}
  0x4b   :  { %s732_s4 = scalar_lea.vmem %s71_s23, 1024  ;;  %p737_p8 = scmp.lt.s32.totalorder %s71_s23, %s71_s23 }
  0x4c   :  { %p733_p7 = scmp.ne.s32.totalorder %s71_s23, %s732_s4  ;;  %p738_p9 = scmp.lt.s32.totalorder %s732_s4, %s732_s4 }
  0x4e   :  { %p739_p10 = por %p738_p9, %p737_p8 }
  0x50   :  { %p740_p11 = pnand %p739_p10, %p733_p7 }
  0x52   :  { %743 = shalt.err (!%p740_p11)
}
  0x53   :  { %76 = dma.hbm_to_vmem [thread:$0]  %s960_s6, 1024, %s71_s23, [#allocation9], %s777_s28, %s777_s28, %s778_s29  }
  0x54   :  { %766 = dma.done.wait [#allocation3], 64  }
  0x55   :  { %767 = vsyncadd [#allocation3], 4294967232 }
  0x56   :  { %768 = dma.done.wait [#allocation6], 320  }
  0x57   :  { %769 = vsyncadd [#allocation6], 4294966976 }
  0x58   :  { %770 = dma.done.wait [#allocation9], 2048  }
  0x59   :  { %771 = vsyncadd [#allocation9], 4294965248  ;;  %v781_v0 = vmov 0.0   ;;  %vm782_vm0 = vmmov 0   ;;  %vm112_vm1 = vcmask 1042432   ;;  %v96_v6 = vld [vmem:[#allocation5] sm:$0xff] }
  0x5a   :  { %550 = vmatprep.subr.bf16.mxu0 %v781_v0  ;;  %556 = vmatprep.subr.bf16.mxu1 %v781_v0  ;;  %v105_v1 = vld [vmem:[#allocation7 + $0x4] sm:$0x7]  ;;  %v103_v2 = vld [vmem:[#allocation7] sm:$0x7]  ;;  %v95_v3 = vld [vmem:[#allocation2] sm:$0xf] }
  0x5b   :  { %552 = vmatprep.mubr.msk.bf16.mxu0 %vm782_vm0, %v781_v0  ;;  %558 = vmatprep.mubr.msk.bf16.mxu1 %vm782_vm0, %v781_v0  ;;  %v114_v4 = vsel %vm112_vm1, %v105_v1, 0  ;;  %v160_v5 = vsel %vm112_vm1, %v103_v2, 0  ;;  %vm100_vm2 = vcmask 1043456   ;;  %v203_v7 = vld [vmem:[#allocation7 + $0x8] sm:$0x7]  ;;  %v98_v8 = vrot.slane %v96_v6, 4 }
  0x5c   :  { %551 = vmatpush3.bf16.msra.mxu0 %v114_v4  ;;  %557 = vmatpush3.bf16.msra.mxu1 %v160_v5  ;;  %vm108_vm3 = vcmask 48128   ;;  %v618_v10 = vld [vmem:[#allocation8] sm:$0xff]   ;;  %v209_v12 = vsel %vm112_vm1, %v203_v7, 0  ;;  %v619_v13 = vld [vmem:[#allocation8 + $0x8] sm:$0xff]   ;;  %v620_v16 = vld [vmem:[#allocation8 + $0x10] sm:$0xff]   ;;  %s783_s22 = smov [#allocation11]  }
  0x5d   :  { %562 = vmatprep.subr.bf16.mxu0 %v781_v0  ;;  %568 = vmatprep.subr.bf16.mxu1 %v781_v0  ;;  %v101_v9 = vsel %vm100_vm2, %v95_v3, %v98_v8  ;;  %v621_v17 = vld [vmem:[#allocation8 + $0x18] sm:$0xff]   ;;  %v622_v18 = vld [vmem:[#allocation8 + $0x20] sm:$0xff]   ;;  %v623_v19 = vld [vmem:[#allocation8 + $0x28] sm:$0xff]   ;;  %s493_s23 = sshll.u32 %s783_s22, 4  ;;  %s494_s23 = int_to_ptr.vmem [resolvable:$true] %s493_s23 }
  0x5e   :  { %v102_v11 = vpack.c.bf16 %v98_v8, %v101_v9  ;;  %v624_v20 = vld [vmem:[#allocation8 + $0x30] sm:$0xff]   ;;  %v625_v21 = vld [vmem:[#allocation8 + $0x38] sm:$0xff]   ;;  %v626_v22 = vld [vmem:[#allocation10] sm:$0xff]   ;;  %p749_p13 = scmp.lt.s32.totalorder %s494_s23, %s494_s23 }
  0x5f   :  { %v627_v23 = vld [vmem:[#allocation10 + $0x8] sm:$0xff]   ;;  %v628_v24 = vld [vmem:[#allocation10 + $0x10] sm:$0xff]   ;;  %v629_v25 = vld [vmem:[#allocation10 + $0x18] sm:$0xff]  }
  0x60   :  { %v107_v14 = vrot.slane %v102_v11, 1  ;;  %559 = vmatmul.mubr.msk.bf16.vlgmr.msra.gmra.mrb[0].mxu1 %vm108_vm3, %v102_v11  ;;  %v204_v15 = vrot.slane %v102_v11, 2  ;;  %v630_v26 = vld [vmem:[#allocation10 + $0x20] sm:$0xff]   ;;  %v631_v27 = vld [vmem:[#allocation10 + $0x28] sm:$0xff]   ;;  %v632_v46 = vld [vmem:[#allocation10 + $0x30] sm:$0xff]  }
  0x61   :  { %569 = vmatpush3.bf16.msra.mxu1 %v618_v10  ;;  %584 = vmatprep.mubr.msk.bf16.mxu1 %vm782_vm0, %v781_v0  ;;  %v507_v38 = vld [vmem:[%s957_s3] ss:$0 sm:$0xff]  ;;  %v633_v47 = vld [vmem:[#allocation10 + $0x38] sm:$0xff]  }
  0x62   :  { %553 = vmatmul.mubr.msk.bf16.vlgmr.msra.gmra.mrb[0].mxu0 %vm108_vm3, %v107_v14  ;;  %570 = vmatprep.subr.bf16.mxu1 %v781_v0  ;;  %v508_v48 = vld [vmem:[%s959_s5] ss:$0 sm:$0xff]  ;;  %s744_s5 = scalar_lea.vmem %s494_s23, 128 }
  0x63   :  { %563 = vmatpush3.bf16.msra.mxu0 %v209_v12  ;;  %564 = vmatprep.mubr.msk.bf16.mxu0 %vm782_vm0, %v781_v0  ;;  %v517_v56 = vld [vmem:[%s961_s7] ss:$0 sm:$0xff]  ;;  %p745_p12 = scmp.ne.s32.totalorder %s494_s23, %s744_s5  ;;  %p750_p0 = scmp.lt.s32.totalorder %s744_s5, %s744_s5 }
  0x64   :  { %588 = vmatprep.subr.bf16.mxu0 %v781_v0 }
  0x65   :  { %571 = vmatpush3.bf16.msra.mxu1 %v619_v13  ;;  %p751_p1 = por %p750_p0, %p749_p13 }
  0x66   :  { %572 = vmatprep.subr.bf16.mxu1 %v781_v0 }
  0x67   :  { %p752_p2 = pnand %p751_p1, %p745_p12 }
  0x69   :  { %573 = vmatpush3.bf16.msra.mxu1 %v620_v16 }
  0x6a   :  { %565 = vmatmul.mubr.msk.bf16.vlgmr.msra.gmra.mrb[4].mxu0 %vm108_vm3, %v204_v15  ;;  %574 = vmatprep.subr.bf16.mxu1 %v781_v0 }
  0x6b   :  { %604 = vmatprep.mubr.msk.bf16.mxu0 %vm782_vm0, %v781_v0  ;;  %589 = vmatpush3.bf16.msra.mxu0 %v626_v22 }
  0x6c   :  { %590 = vmatprep.subr.bf16.mxu0 %v781_v0 }
  0x6d   :  { %575 = vmatpush3.bf16.msra.mxu1 %v621_v17 }
  0x6e   :  { %576 = vmatprep.subr.bf16.mxu1 %v781_v0 }
  0x6f   :  { %591 = vmatpush3.bf16.msra.mxu0 %v627_v23 }
  0x70   :  { %592 = vmatprep.subr.bf16.mxu0 %v781_v0 }
  0x71   :  { %577 = vmatpush3.bf16.msra.mxu1 %v622_v18 }
  0x72   :  { %578 = vmatprep.subr.bf16.mxu1 %v781_v0 }
  0x73   :  { %593 = vmatpush3.bf16.msra.mxu0 %v628_v24 }
  0x74   :  { %594 = vmatprep.subr.bf16.mxu0 %v781_v0 }
  0x75   :  { %579 = vmatpush3.bf16.msra.mxu1 %v623_v19 }
  0x76   :  { %580 = vmatprep.subr.bf16.mxu1 %v781_v0 }
  0x77   :  { %595 = vmatpush3.bf16.msra.mxu0 %v629_v25 }
  0x78   :  { %596 = vmatprep.subr.bf16.mxu0 %v781_v0 }
  0x79   :  { %581 = vmatpush3.bf16.msra.mxu1 %v624_v20 }
  0x7a   :  { %582 = vmatprep.subr.bf16.mxu1 %v781_v0 }
  0x7b   :  { %597 = vmatpush3.bf16.msra.mxu0 %v630_v26 }
  0x7c   :  { %598 = vmatprep.subr.bf16.mxu0 %v781_v0 }
  0x7d   :  { %583 = vmatpush3.bf16.msra.mxu1 %v625_v21 }
  0x7f   :  { %599 = vmatpush3.bf16.msra.mxu0 %v631_v27 }
  0x80   :  { %600 = vmatprep.subr.bf16.mxu0 %v781_v0 }
  0x83   :  { %601 = vmatpush3.bf16.msra.mxu0 %v632_v46 }
  0x84   :  { %602 = vmatprep.subr.bf16.mxu0 %v781_v0 }
  0x87   :  { %603 = vmatpush3.bf16.msra.mxu0 %v633_v47 }
 0x133   :  { %v196_v28 = vpop.f32.mrb[0].mxu1 }
 0x134   :  { %v560_v29 = vpop.f32.mrb[1].mxu1 }
 0x135   :  { %v150_v30 = vpop.f32.mrb[0].mxu0  ;;  %v199_v31 = vpop.f32.mrb[2].mxu1 }
 0x136   :  { %v197_v32 = vadd.f32 %v196_v28, %v150_v30  ;;  %v554_v33 = vpop.f32.mrb[1].mxu0  ;;  %v561_v34 = vpop.f32.mrb[3].mxu1 }
 0x137   :  { %v153_v35 = vpop.f32.mrb[2].mxu0 }
 0x138   :  { %v555_v36 = vpop.f32.mrb[3].mxu0 }
 0x13d   :  { %v245_v37 = vpop.f32.mrb[4].mxu0 }
 0x13e   :  { %v251_v39 = vadd.f32 %v245_v37, %v197_v32  ;;  %v566_v40 = vpop.f32.mrb[5].mxu0 }
 0x13f   :  { %v248_v41 = vpop.f32.mrb[6].mxu0 }
 0x140   :  { %v259_v42 = vadd.f32 %v507_v38, %v251_v39  ;;  %v567_v43 = vpop.f32.mrb[7].mxu0 }
 0x142   :  { %v277_v44 = vmax.f32 %v259_v42, 0.0 }
 0x144   :  { %v278_v45 = vpack.c.bf16 %v277_v44, %v277_v44 }
 0x146   :  { %585 = vmatmul.mubr.bf16.vlgmr.msra.gmra.mrb[4].mxu1 %v278_v45 }
 0x219   :  { %v367_v49 = vpop.f32.mrb[4].mxu1 }
 0x21a   :  { %v368_v50 = vadd.f32 %v508_v48, %v367_v49  ;;  %v586_v51 = vpop.f32.mrb[5].mxu1 }
 0x21b   :  { %v370_v52 = vpop.f32.mrb[6].mxu1 }
 0x21c   :  { %v390_v53 = vmax.f32 %v368_v50, 0.0  ;;  %v587_v54 = vpop.f32.mrb[7].mxu1 }
 0x21e   :  { %v391_v55 = vpack.c.bf16 %v390_v53, %v390_v53 }
 0x220   :  { %605 = vmatmul.mubr.bf16.vlgmr.msra.gmra.mrb[8].mxu0 %v391_v55 }
 0x2f3   :  { %v480_v57 = vpop.f32.mrb[8].mxu0 }
 0x2f4   :  { %v481_v58 = vadd.f32 %v517_v56, %v480_v57  ;;  %v606_v59 = vpop.f32.mrb[9].mxu0 }
 0x2f5   :  { %v483_v60 = vpop.f32.mrb[10].mxu0 }
 0x2f6   :  { %486 = vst [vmem:[#allocation11] sm:$0xff] %v481_v58  ;;  %v607_v61 = vpop.f32.mrb[11].mxu0 }
 0x2f7   :  { %755 = shalt.err (!%p752_p2)
}
 0x2f8   :  { %s756_s7 = scalar_lea.hbm %s962_s8, 128 }
 0x2f9   :  { %p757_p3 = scmp.ne.s32.totalorder %s962_s8, %s756_s7  ;;  %p760_p4 = scmp.lt.u32.totalorder %s756_s7, %s962_s8 }
 0x2fb   :  { %p762_p5 = pnand %p760_p4, %p757_p3 }
 0x2fd   :  { %765 = shalt.err (!%p762_p5)
}
 0x2fe   :  { %496 = dma.vmem_to_hbm [thread:$0]  %s494_s23, 128, %s962_s8, [#allocation4]  }
 0x2ff   :  { %772 = dma.done.wait [#allocation4], 128  }
 0x300   :  { %773 = vsyncadd [#allocation4], 4294967168 }
 0x301   :  { %500 = vsyncpa [#allocation3], 1 }
 0x302   :  { %501 = vsyncpa [#allocation6], 1 }
 0x303   :  { %502 = vsyncpa [#allocation9], 1 }
 0x304   :  { %503 = vsyncpa [#allocation4], 1 }

</bundles_post_ra>
